<compile_context>
chip_gen: v7x
topology: tpu7x:2x2x1
jax: 0.10.0
libtpu: 0.0.40
codegen_flags: <defaults>
</compile_context>

<pallas_src>
import math
import functools

import jax
import jax.numpy as jnp
from jax import lax
from jax.experimental import pallas as pl
from jax.experimental.pallas import tpu as pltpu


def _attn_kernel(x_ref, wq_ref, wkv_ref, wproj_ref, o_ref, kv_sc, y_sc,
                 *, tq, n_head, hd, approx_recip):
    # x_ref:     (1, T, C)   activations for one batch row (resident per b)
    # wq_ref:    (C, C)      Q projection (1/sqrt(hd) folded in), resident
    # wkv_ref:   (C, 2C)     [K | V] projection, resident
    # wproj_ref: (C, C)      output projection (1/sqrt(24) folded in), resident
    # o_ref:     (1, tq, C)  output block for this q tile
    # kv_sc:     (T, 2C)     per-batch K/V activations (compute dtype)
    # y_sc:      (tq, C)     per-q-tile concatenated head outputs
    qi = pl.program_id(1)
    T = x_ref.shape[1]
    C = x_ref.shape[2]
    cdt = kv_sc.dtype
    tkv = tq

    # --- K/V projection for the whole batch row, once per batch (full width).
    @pl.when(qi == 0)
    def _():
        kv_sc[...] = jnp.dot(x_ref[0], wkv_ref[...],
                             preferred_element_type=jnp.float32).astype(cdt)

    row0 = pl.multiple_of(qi * tq, tq)

    # --- Q projection for this q tile, once per tile (full width, scale folded).
    xq = x_ref[0, pl.ds(row0, tq), :]                                  # (tq, C)
    q_all = jnp.dot(xq, wq_ref[...],
                    preferred_element_type=jnp.float32).astype(cdt)    # (tq, C)

    neg_big = jnp.float32(-1e30)
    rows = row0 + lax.broadcasted_iota(jnp.int32, (tq, 1), 0)          # (tq, 1)
    n_kv = qi + 1        # kv tiles 0..qi cover columns [0, row0 + tq) (causal)

    # --- Per-head attention with online softmax over causal kv tiles.
    for h in range(n_head):                       # static unroll: static offsets
        qh = q_all[:, h * hd:(h + 1) * hd]        # (tq, hd)

        def body(j, carry, qh=qh, h=h):
            m, l, acc = carry
            col0 = pl.multiple_of(j * tkv, tkv)
            kt = kv_sc[pl.ds(col0, tkv), pl.ds(h * hd, hd)]            # (tkv, hd)
            vt = kv_sc[pl.ds(col0, tkv), pl.ds(C + h * hd, hd)]        # (tkv, hd)
            # Contract the head dim directly ('qd,kd->qk'): no K transpose.
            s = lax.dot_general(qh, kt, (((1,), (1,)), ((), ())),
                                preferred_element_type=jnp.float32)    # (tq, tkv)
            cols = col0 + lax.broadcasted_iota(jnp.int32, (1, tkv), 1)
            s = jnp.where(cols <= rows, s, neg_big)
            m_new = jnp.maximum(m, jnp.max(s, axis=-1, keepdims=True))
            alpha = jnp.exp(m - m_new)
            p = jnp.exp(s - m_new)
            l_new = alpha * l + jnp.sum(p, axis=-1, keepdims=True)
            acc_new = alpha * acc + jnp.dot(p.astype(cdt), vt,
                                            preferred_element_type=jnp.float32)
            return m_new, l_new, acc_new

        m0 = jnp.full((tq, 1), neg_big, dtype=jnp.float32)
        l0 = jnp.zeros((tq, 1), dtype=jnp.float32)
        a0 = jnp.zeros((tq, hd), dtype=jnp.float32)
        _, l, acc = lax.fori_loop(0, n_kv, body, (m0, l0, a0))

        y_sc[:, pl.ds(h * hd, hd)] = (
            acc * pl.reciprocal(l, approx=approx_recip)).astype(cdt)

    # --- Output projection ONCE per q tile at full contraction width K=C.
    o_ref[0] = jnp.dot(y_sc[...], wproj_ref[...],
                       preferred_element_type=jnp.float32).astype(o_ref.dtype)


def _default_max_q_tile():
    # v5e MXU is 4x(128x128): tq>128 buys nothing but doubles the f32 score
    # tile; v6e/v7x have 256-wide MXUs, so prefer tq=256 there.
    try:
        kind = jax.devices()[0].device_kind.lower()
    except Exception:
        return 256
    if "v5 lite" in kind or "v5e" in kind or "v5litepod" in kind:
        return 128
    return 256


def _pick_tq(T, max_tile):
    for cand in (256, 128, 64, 32, 16, 8):
        if cand <= max_tile and T % cand == 0:
            return cand
    return T


def _vmem_limit_bytes(est_bytes):
    # Generation-aware cap (~85% of physical VMEM): ~54 MiB on v7x (64 MiB
    # physical), ~108 MiB on v5e/v6e (128 MiB), leaving Mosaic scratch headroom.
    try:
        cap = int(pltpu.get_tpu_info().vmem_capacity_bytes)
    except Exception:
        cap = 64 * 1024 * 1024            # conservative (v7x physical)
    headroom_cap = int(cap * 0.85)
    return int(min(headroom_cap, max(32 * 1024 * 1024, 2 * est_bytes)))


def causal_self_attention(x, w_attn, w_proj, *, n_head, tq=None, precise=False):
    """x: (B, T, C) f32; w_attn: (3C, C); w_proj: (C, C) (PyTorch Linear layout)."""
    B, T, C = x.shape
    assert C % n_head == 0
    assert w_attn.shape == (3 * C, C)
    assert w_proj.shape == (C, C)
    hd = C // n_head

    compute_dtype = jnp.float32 if precise else jnp.bfloat16
    scale = 1.0 / math.sqrt(hd)            # SDPA default softmax scale
    out_scale = 1.0 / math.sqrt(24.0)      # final y / sqrt(24)

    if tq is None:
        tq = _pick_tq(T, _default_max_q_tile())
    assert T % tq == 0
    nq = T // tq

    # --- wrapper-side layout plumbing (no in-kernel transposes) --------------
    w_t = w_attn.T                                        # (C, 3C) = W^T
    w_q = (w_t[:, :C] * scale).astype(compute_dtype)      # (C, C)  Q, scaled
    w_kv = w_t[:, C:].astype(compute_dtype)               # (C, 2C) [K | V]
    w_prj = (w_proj.T * out_scale).astype(compute_dtype)  # (C, C)  out proj
    x_c = x.astype(compute_dtype)

    # --- VMEM budget estimate --------------------------------------------------
    isz = jnp.dtype(compute_dtype).itemsize
    est = (
        2 * T * C * isz            # x block (double-buffered)
        + 2 * 4 * C * C * isz      # wq + wkv + wproj blocks (double-buffered)
        + 2 * tq * C * 4           # f32 output block (double-buffered)
        + T * 2 * C * isz          # K/V scratch
        + tq * C * isz             # y scratch
        + tq * C * 4               # Q tile (f32 accumulate)
        + 6 * tq * tq * 4          # score / softmax temporaries (rough)
    )
    vmem_limit = _vmem_limit_bytes(est)

    # --- advisory cost estimate --------------------------------------------------
    flops = int(2 * B * T * C * 3 * C        # qkv projection
                + 2 * B * T * C * C          # output projection
                + 2 * B * T * T * C)         # causal QK^T + PV (~half of dense)
    cost = pl.CostEstimate(
        flops=flops,
        transcendentals=int(B * n_head * T * T // 2),
        bytes_accessed=int(2 * B * T * C * 4 + 4 * C * C * 4),
    )

    kernel = functools.partial(_attn_kernel, tq=tq, n_head=n_head, hd=hd,
                               approx_recip=not precise)

    return pl.pallas_call(
        kernel,
        out_shape=jax.ShapeDtypeStruct((B, T, C), jnp.float32),
        grid_spec=pltpu.PrefetchScalarGridSpec(
            num_scalar_prefetch=0,
            grid=(B, nq),
            in_specs=[
                # x: one batch row, resident across the q-tile axis.
                pl.BlockSpec((1, T, C), lambda b, q: (b, 0, 0)),
                # weights: resident for the whole grid.
                pl.BlockSpec((C, C), lambda b, q: (0, 0)),
                pl.BlockSpec((C, 2 * C), lambda b, q: (0, 0)),
                pl.BlockSpec((C, C), lambda b, q: (0, 0)),
            ],
            # Output: one q tile per step (lane-dense full-block store).
            out_specs=pl.BlockSpec((1, tq, C), lambda b, q: (b, q, 0)),
            scratch_shapes=[
                pltpu.VMEM((T, 2 * C), compute_dtype),   # K/V for current batch
                pltpu.VMEM((tq, C), compute_dtype),      # per-tile head outputs
            ],
        ),
        compiler_params=pltpu.CompilerParams(
            # q-tile axis must stay "arbitrary": the per-batch K/V scratch is
            # initialized at qi == 0 and reused by later tiles of the same b.
            dimension_semantics=("parallel", "arbitrary"),
            vmem_limit_bytes=vmem_limit,
        ),
        cost_estimate=cost,
    )(x_c, w_q, w_kv, w_prj)


def _reference(x, w_attn, w_proj, *, n_head):
    """Pure-JAX reference matching the PyTorch forward (highest precision)."""
    B, T, C = x.shape
    hd = C // n_head
    hp = lax.Precision.HIGHEST
    qkv = jnp.einsum("btc,oc->bto", x, w_attn, precision=hp)       # x @ W^T
    q, k, v = jnp.split(qkv, 3, axis=2)
    q = q.reshape(B, T, n_head, hd).transpose(0, 2, 1, 3)
    k = k.reshape(B, T, n_head, hd).transpose(0, 2, 1, 3)
    v = v.reshape(B, T, n_head, hd).transpose(0, 2, 1, 3)
    s = jnp.einsum("bhqd,bhkd->bhqk", q, k, precision=hp) / math.sqrt(hd)
    mask = jnp.tril(jnp.ones((T, T), dtype=bool))
    s = jnp.where(mask, s, -jnp.inf)
    p = jax.nn.softmax(s, axis=-1)
    y = jnp.einsum("bhqk,bhkd->bhqd", p, v, precision=hp)
    y = y.transpose(0, 2, 1, 3).reshape(B, T, C)
    y = jnp.einsum("btc,oc->bto", y, w_proj, precision=hp)
    return y / math.sqrt(24.0)


if __name__ == "__main__":
    # Small config consistent with the module (n_embd divisible by n_head).
    B, T, C, n_head = 2, 8, 32, 4

    key = jax.random.PRNGKey(0)
    kx, ka, kp = jax.random.split(key, 3)

    x = jax.random.normal(kx, (B, T, C), dtype=jnp.float32)
    # PyTorch Linear weight convention: (out_features, in_features), no bias.
    w_attn = 0.02 * jax.random.normal(ka, (3 * C, C), dtype=jnp.float32)
    w_proj = 0.02 * jax.random.normal(kp, (C, C), dtype=jnp.float32)

    ref = _reference(x, w_attn, w_proj, n_head=n_head)

    # Precise path (f32 matmuls, exact reciprocal): tight semantic check.
    out_f32 = jax.block_until_ready(
        causal_self_attention(x, w_attn, w_proj, n_head=n_head, precise=True))
    assert out_f32.shape == (B, T, C)
    assert jnp.allclose(out_f32, ref, atol=1e-5, rtol=1e-3), "f32 path mismatch"

    # Fast path (bf16 MXU inputs, approx reciprocal): relaxed tolerance.
    out_fast = jax.block_until_ready(
        causal_self_attention(x, w_attn, w_proj, n_head=n_head))
    assert out_fast.shape == (B, T, C)
    assert jnp.allclose(out_fast, ref, atol=1e-3, rtol=5e-2), "bf16 path mismatch"

    print("KERNEL_OK")
</pallas_src>

<mosaic_0001>
module attributes {stable_mosaic.version = 11 : i64} {
  func.func @_attn_kernel(%arg0: i32, %arg1: i32, %arg2: memref<1x8x32xf32, #tpu.memory_space<vmem>>, %arg3: memref<32x32xf32, #tpu.memory_space<vmem>>, %arg4: memref<32x64xf32, #tpu.memory_space<vmem>>, %arg5: memref<32x32xf32, #tpu.memory_space<vmem>>, %arg6: memref<1x8x32xf32, #tpu.memory_space<vmem>>, %arg7: memref<8x64xf32, #tpu.memory_space<vmem>>, %arg8: memref<8x32xf32, #tpu.memory_space<vmem>>) attributes {dimension_semantics = [#tpu.dimension_semantics<parallel>, #tpu.dimension_semantics<arbitrary>], iteration_bounds = array<i64: 2, 1>, scalar_prefetch = 0 : i64, scratch_operands = 2 : i64, tpu.core_type = #tpu.core_type<tc>, window_params = [{transform_indices = @transform_0, window_bounds = array<i64: 1, 8, 32>}, {pipeline_mode = #tpu.pipeline_mode<synchronous>, transform_indices = @transform_1, window_bounds = array<i64: 32, 32>}, {pipeline_mode = #tpu.pipeline_mode<synchronous>, transform_indices = @transform_2, window_bounds = array<i64: 32, 64>}, {pipeline_mode = #tpu.pipeline_mode<synchronous>, transform_indices = @transform_3, window_bounds = array<i64: 32, 32>}, {transform_indices = @transform_4, window_bounds = array<i64: 1, 8, 32>}]} {
    %c0_i32 = arith.constant 0 : i32
    %0 = arith.cmpi eq, %arg1, %c0_i32 : i32
    %1 = arith.extui %0 : i1 to i32
    %c0_i32_0 = arith.constant 0 : i32
    %2 = arith.cmpi ne, %1, %c0_i32_0 : i32
    scf.if %2 {
      %c0_41 = arith.constant 0 : index
      %c0_42 = arith.constant 0 : index
      %c0_43 = arith.constant 0 : index
      %64 = vector.load %arg2[%c0_41, %c0_42, %c0_43] : memref<1x8x32xf32, #tpu.memory_space<vmem>>, vector<1x8x32xf32>
      %65 = vector.shape_cast %64 : vector<1x8x32xf32> to vector<8x32xf32>
      %c0_44 = arith.constant 0 : index
      %c0_45 = arith.constant 0 : index
      %66 = vector.load %arg4[%c0_44, %c0_45] : memref<32x64xf32, #tpu.memory_space<vmem>>, vector<32x64xf32>
      %cst_46 = arith.constant dense<0.000000e+00> : vector<8x64xf32>
      %67 = tpu.matmul %65, %66, %cst_46 {dimension_numbers = #tpu.dot_dimension_numbers<[1], [0], [0], [1], [0, 0, 1, 1], [], []>} : vector<8x32xf32>, vector<32x64xf32>, vector<8x64xf32> -> vector<8x64xf32>
      %c0_47 = arith.constant 0 : index
      %c0_48 = arith.constant 0 : index
      %68 = vector.load %arg7[%c0_47, %c0_48] : memref<8x64xf32, #tpu.memory_space<vmem>>, vector<8x64xf32>
      tpu.vector_store %arg7[%c0_47, %c0_48], %67 {strides = array<i32>} : memref<8x64xf32, #tpu.memory_space<vmem>>, vector<8x64xf32>,
    } else {
    }
    %c8_i32 = arith.constant 8 : i32
    %3 = arith.muli %arg1, %c8_i32 : i32
    %4 = tpu.assume_multiple %3, 8 : i32
    %c0 = arith.constant 0 : index
    %5 = arith.index_cast %4 : i32 to index
    %c0_1 = arith.constant 0 : index
    %6 = vector.load %arg2[%c0, %5, %c0_1] : memref<1x8x32xf32, #tpu.memory_space<vmem>>, vector<1x8x32xf32>
    %7 = vector.shape_cast %6 : vector<1x8x32xf32> to vector<8x32xf32>
    %c0_2 = arith.constant 0 : index
    %c0_3 = arith.constant 0 : index
    %8 = vector.load %arg3[%c0_2, %c0_3] : memref<32x32xf32, #tpu.memory_space<vmem>>, vector<32x32xf32>
    %cst = arith.constant dense<0.000000e+00> : vector<8x32xf32>
    %9 = tpu.matmul %7, %8, %cst {dimension_numbers = #tpu.dot_dimension_numbers<[1], [0], [0], [1], [0, 0, 1, 1], [], []>} : vector<8x32xf32>, vector<32x32xf32>, vector<8x32xf32> -> vector<8x32xf32>
    %10 = tpu.iota {dimensions = array<i32: 0>} : vector<8x1xi32>
    %11 = vector.broadcast %4 : i32 to vector<8x1xi32>
    %12 = arith.addi %11, %10 : vector<8x1xi32>
    %c1_i32 = arith.constant 1 : i32
    %13 = arith.addi %arg1, %c1_i32 : i32
    %14 = vector.extract_strided_slice %9 {offsets = [0, 0], sizes = [8, 8], strides = [1, 1]} : vector<8x32xf32> to vector<8x8xf32>
    %cst_4 = arith.constant -1.000000e+30 : f32
    %15 = vector.broadcast %cst_4 : f32 to vector<8x1xf32>
    %cst_5 = arith.constant 0.000000e+00 : f32
    %16 = vector.broadcast %cst_5 : f32 to vector<8x1xf32>
    %cst_6 = arith.constant 0.000000e+00 : f32
    %17 = vector.broadcast %cst_6 : f32 to vector<8x8xf32>
    %cst_7 = arith.constant -1.000000e+30 : f32
    %c0_i32_8 = arith.constant 0 : i32
    %18 = arith.subi %13, %c0_i32_8 : i32
    %19 = arith.addi %c0_i32_8, %18 : i32
    %c1_i32_9 = arith.constant 1 : i32
    %20:3 = scf.for %arg9 = %c0_i32_8 to %19 step %c1_i32_9 iter_args(%arg10 = %15, %arg11 = %16, %arg12 = %17) -> (vector<8x1xf32>, vector<8x1xf32>, vector<8x8xf32>)  : i32 {
      %c8_i32_41 = arith.constant 8 : i32
      %64 = arith.muli %arg9, %c8_i32_41 : i32
      %65 = tpu.assume_multiple %64, 8 : i32
      %66 = arith.index_cast %65 : i32 to index
      %c0_42 = arith.constant 0 : index
      %67 = vector.load %arg7[%66, %c0_42] : memref<8x64xf32, #tpu.memory_space<vmem>>, vector<8x8xf32>
      %68 = arith.index_cast %65 : i32 to index
      %c32 = arith.constant 32 : index
      %69 = vector.load %arg7[%68, %c32] : memref<8x64xf32, #tpu.memory_space<vmem>>, vector<8x8xf32>
      %cst_43 = arith.constant dense<0.000000e+00> : vector<8x8xf32>
      %70 = tpu.matmul %14, %67, %cst_43 {dimension_numbers = #tpu.dot_dimension_numbers<[1], [1], [0], [0], [0, 0, 1, 0], [], []>} : vector<8x8xf32>, vector<8x8xf32>, vector<8x8xf32> -> vector<8x8xf32>
      %71 = tpu.iota {dimensions = array<i32: 1>} : vector<1x8xi32>
      %72 = vector.broadcast %65 : i32 to vector<1x8xi32>
      %73 = arith.addi %72, %71 : vector<1x8xi32>
      %74 = vector.broadcast %73 : vector<1x8xi32> to vector<8x8xi32>
      %75 = vector.broadcast %12 : vector<8x1xi32> to vector<8x8xi32>
      %76 = arith.cmpi sle, %74, %75 : vector<8x8xi32>
      %77 = vector.broadcast %cst_7 : f32 to vector<8x8xf32>
      %78 = arith.select %76, %70, %77 : vector<8x8xi1>, vector<8x8xf32>
      %cst_44 = arith.constant dense<0xFF800000> : vector<8xf32>
      %79 = vector.multi_reduction <maximumf>, %78, %cst_44 [1] : vector<8x8xf32> to vector<8xf32>
      %80 = vector.shape_cast %79 : vector<8xf32> to vector<8x1xf32>
      %81 = arith.maximumf %arg10, %80 : vector<8x1xf32>
      %82 = arith.subf %arg10, %81 : vector<8x1xf32>
      %83 = math.exp %82 : vector<8x1xf32>
      %84 = vector.broadcast %81 : vector<8x1xf32> to vector<8x8xf32>
      %85 = arith.subf %78, %84 : vector<8x8xf32>
      %86 = math.exp %85 : vector<8x8xf32>
      %87 = arith.mulf %83, %arg11 : vector<8x1xf32>
      %cst_45 = arith.constant dense<0.000000e+00> : vector<8xf32>
      %88 = vector.multi_reduction <add>, %86, %cst_45 [1] : vector<8x8xf32> to vector<8xf32>
      %89 = vector.shape_cast %88 : vector<8xf32> to vector<8x1xf32>
      %90 = arith.addf %87, %89 : vector<8x1xf32>
      %91 = vector.broadcast %83 : vector<8x1xf32> to vector<8x8xf32>
      %92 = arith.mulf %91, %arg12 : vector<8x8xf32>
      %cst_46 = arith.constant dense<0.000000e+00> : vector<8x8xf32>
      %93 = tpu.matmul %86, %69, %cst_46 {dimension_numbers = #tpu.dot_dimension_numbers<[1], [0], [0], [1], [0, 0, 1, 1], [], []>} : vector<8x8xf32>, vector<8x8xf32>, vector<8x8xf32> -> vector<8x8xf32>
      %94 = arith.addf %92, %93 : vector<8x8xf32>
      scf.yield %81, %90, %94 : vector<8x1xf32>, vector<8x1xf32>, vector<8x8xf32>
    }
    %21 = tpu.reciprocal %20#1 : vector<8x1xf32> -> vector<8x1xf32>
    %22 = vector.broadcast %21 : vector<8x1xf32> to vector<8x8xf32>
    %23 = arith.mulf %20#2, %22 : vector<8x8xf32>
    %c0_10 = arith.constant 0 : index
    %c0_11 = arith.constant 0 : index
    %24 = vector.load %arg8[%c0_10, %c0_11] : memref<8x32xf32, #tpu.memory_space<vmem>>, vector<8x8xf32>
    tpu.vector_store %arg8[%c0_10, %c0_11], %23 {strides = array<i32>} : memref<8x32xf32, #tpu.memory_space<vmem>>, vector<8x8xf32>,
    %25 = vector.extract_strided_slice %9 {offsets = [0, 8], sizes = [8, 8], strides = [1, 1]} : vector<8x32xf32> to vector<8x8xf32>
    %cst_12 = arith.constant -1.000000e+30 : f32
    %26 = vector.broadcast %cst_12 : f32 to vector<8x1xf32>
    %cst_13 = arith.constant 0.000000e+00 : f32
    %27 = vector.broadcast %cst_13 : f32 to vector<8x1xf32>
    %cst_14 = arith.constant 0.000000e+00 : f32
    %28 = vector.broadcast %cst_14 : f32 to vector<8x8xf32>
    %cst_15 = arith.constant -1.000000e+30 : f32
    %c0_i32_16 = arith.constant 0 : i32
    %29 = arith.subi %13, %c0_i32_16 : i32
    %30 = arith.addi %c0_i32_16, %29 : i32
    %c1_i32_17 = arith.constant 1 : i32
    %31:3 = scf.for %arg9 = %c0_i32_16 to %30 step %c1_i32_17 iter_args(%arg10 = %26, %arg11 = %27, %arg12 = %28) -> (vector<8x1xf32>, vector<8x1xf32>, vector<8x8xf32>)  : i32 {
      %c8_i32_41 = arith.constant 8 : i32
      %64 = arith.muli %arg9, %c8_i32_41 : i32
      %65 = tpu.assume_multiple %64, 8 : i32
      %66 = arith.index_cast %65 : i32 to index
      %c8_42 = arith.constant 8 : index
      %67 = vector.load %arg7[%66, %c8_42] : memref<8x64xf32, #tpu.memory_space<vmem>>, vector<8x8xf32>
      %68 = arith.index_cast %65 : i32 to index
      %c40 = arith.constant 40 : index
      %69 = vector.load %arg7[%68, %c40] : memref<8x64xf32, #tpu.memory_space<vmem>>, vector<8x8xf32>
      %cst_43 = arith.constant dense<0.000000e+00> : vector<8x8xf32>
      %70 = tpu.matmul %25, %67, %cst_43 {dimension_numbers = #tpu.dot_dimension_numbers<[1], [1], [0], [0], [0, 0, 1, 0], [], []>} : vector<8x8xf32>, vector<8x8xf32>, vector<8x8xf32> -> vector<8x8xf32>
      %71 = tpu.iota {dimensions = array<i32: 1>} : vector<1x8xi32>
      %72 = vector.broadcast %65 : i32 to vector<1x8xi32>
      %73 = arith.addi %72, %71 : vector<1x8xi32>
      %74 = vector.broadcast %73 : vector<1x8xi32> to vector<8x8xi32>
      %75 = vector.broadcast %12 : vector<8x1xi32> to vector<8x8xi32>
      %76 = arith.cmpi sle, %74, %75 : vector<8x8xi32>
      %77 = vector.broadcast %cst_15 : f32 to vector<8x8xf32>
      %78 = arith.select %76, %70, %77 : vector<8x8xi1>, vector<8x8xf32>
      %cst_44 = arith.constant dense<0xFF800000> : vector<8xf32>
      %79 = vector.multi_reduction <maximumf>, %78, %cst_44 [1] : vector<8x8xf32> to vector<8xf32>
      %80 = vector.shape_cast %79 : vector<8xf32> to vector<8x1xf32>
      %81 = arith.maximumf %arg10, %80 : vector<8x1xf32>
      %82 = arith.subf %arg10, %81 : vector<8x1xf32>
      %83 = math.exp %82 : vector<8x1xf32>
      %84 = vector.broadcast %81 : vector<8x1xf32> to vector<8x8xf32>
      %85 = arith.subf %78, %84 : vector<8x8xf32>
      %86 = math.exp %85 : vector<8x8xf32>
      %87 = arith.mulf %83, %arg11 : vector<8x1xf32>
      %cst_45 = arith.constant dense<0.000000e+00> : vector<8xf32>
      %88 = vector.multi_reduction <add>, %86, %cst_45 [1] : vector<8x8xf32> to vector<8xf32>
      %89 = vector.shape_cast %88 : vector<8xf32> to vector<8x1xf32>
      %90 = arith.addf %87, %89 : vector<8x1xf32>
      %91 = vector.broadcast %83 : vector<8x1xf32> to vector<8x8xf32>
      %92 = arith.mulf %91, %arg12 : vector<8x8xf32>
      %cst_46 = arith.constant dense<0.000000e+00> : vector<8x8xf32>
      %93 = tpu.matmul %86, %69, %cst_46 {dimension_numbers = #tpu.dot_dimension_numbers<[1], [0], [0], [1], [0, 0, 1, 1], [], []>} : vector<8x8xf32>, vector<8x8xf32>, vector<8x8xf32> -> vector<8x8xf32>
      %94 = arith.addf %92, %93 : vector<8x8xf32>
      scf.yield %81, %90, %94 : vector<8x1xf32>, vector<8x1xf32>, vector<8x8xf32>
    }
    %32 = tpu.reciprocal %31#1 : vector<8x1xf32> -> vector<8x1xf32>
    %33 = vector.broadcast %32 : vector<8x1xf32> to vector<8x8xf32>
    %34 = arith.mulf %31#2, %33 : vector<8x8xf32>
    %c0_18 = arith.constant 0 : index
    %c8 = arith.constant 8 : index
    %35 = vector.load %arg8[%c0_18, %c8] : memref<8x32xf32, #tpu.memory_space<vmem>>, vector<8x8xf32>
    tpu.vector_store %arg8[%c0_18, %c8], %34 {strides = array<i32>} : memref<8x32xf32, #tpu.memory_space<vmem>>, vector<8x8xf32>,
    %36 = vector.extract_strided_slice %9 {offsets = [0, 16], sizes = [8, 8], strides = [1, 1]} : vector<8x32xf32> to vector<8x8xf32>
    %cst_19 = arith.constant -1.000000e+30 : f32
    %37 = vector.broadcast %cst_19 : f32 to vector<8x1xf32>
    %cst_20 = arith.constant 0.000000e+00 : f32
    %38 = vector.broadcast %cst_20 : f32 to vector<8x1xf32>
    %cst_21 = arith.constant 0.000000e+00 : f32
    %39 = vector.broadcast %cst_21 : f32 to vector<8x8xf32>
    %cst_22 = arith.constant -1.000000e+30 : f32
    %c0_i32_23 = arith.constant 0 : i32
    %40 = arith.subi %13, %c0_i32_23 : i32
    %41 = arith.addi %c0_i32_23, %40 : i32
    %c1_i32_24 = arith.constant 1 : i32
    %42:3 = scf.for %arg9 = %c0_i32_23 to %41 step %c1_i32_24 iter_args(%arg10 = %37, %arg11 = %38, %arg12 = %39) -> (vector<8x1xf32>, vector<8x1xf32>, vector<8x8xf32>)  : i32 {
      %c8_i32_41 = arith.constant 8 : i32
      %64 = arith.muli %arg9, %c8_i32_41 : i32
      %65 = tpu.assume_multiple %64, 8 : i32
      %66 = arith.index_cast %65 : i32 to index
      %c16_42 = arith.constant 16 : index
      %67 = vector.load %arg7[%66, %c16_42] : memref<8x64xf32, #tpu.memory_space<vmem>>, vector<8x8xf32>
      %68 = arith.index_cast %65 : i32 to index
      %c48 = arith.constant 48 : index
      %69 = vector.load %arg7[%68, %c48] : memref<8x64xf32, #tpu.memory_space<vmem>>, vector<8x8xf32>
      %cst_43 = arith.constant dense<0.000000e+00> : vector<8x8xf32>
      %70 = tpu.matmul %36, %67, %cst_43 {dimension_numbers = #tpu.dot_dimension_numbers<[1], [1], [0], [0], [0, 0, 1, 0], [], []>} : vector<8x8xf32>, vector<8x8xf32>, vector<8x8xf32> -> vector<8x8xf32>
      %71 = tpu.iota {dimensions = array<i32: 1>} : vector<1x8xi32>
      %72 = vector.broadcast %65 : i32 to vector<1x8xi32>
      %73 = arith.addi %72, %71 : vector<1x8xi32>
      %74 = vector.broadcast %73 : vector<1x8xi32> to vector<8x8xi32>
      %75 = vector.broadcast %12 : vector<8x1xi32> to vector<8x8xi32>
      %76 = arith.cmpi sle, %74, %75 : vector<8x8xi32>
      %77 = vector.broadcast %cst_22 : f32 to vector<8x8xf32>
      %78 = arith.select %76, %70, %77 : vector<8x8xi1>, vector<8x8xf32>
      %cst_44 = arith.constant dense<0xFF800000> : vector<8xf32>
      %79 = vector.multi_reduction <maximumf>, %78, %cst_44 [1] : vector<8x8xf32> to vector<8xf32>
      %80 = vector.shape_cast %79 : vector<8xf32> to vector<8x1xf32>
      %81 = arith.maximumf %arg10, %80 : vector<8x1xf32>
      %82 = arith.subf %arg10, %81 : vector<8x1xf32>
      %83 = math.exp %82 : vector<8x1xf32>
      %84 = vector.broadcast %81 : vector<8x1xf32> to vector<8x8xf32>
      %85 = arith.subf %78, %84 : vector<8x8xf32>
      %86 = math.exp %85 : vector<8x8xf32>
      %87 = arith.mulf %83, %arg11 : vector<8x1xf32>
      %cst_45 = arith.constant dense<0.000000e+00> : vector<8xf32>
      %88 = vector.multi_reduction <add>, %86, %cst_45 [1] : vector<8x8xf32> to vector<8xf32>
      %89 = vector.shape_cast %88 : vector<8xf32> to vector<8x1xf32>
      %90 = arith.addf %87, %89 : vector<8x1xf32>
      %91 = vector.broadcast %83 : vector<8x1xf32> to vector<8x8xf32>
      %92 = arith.mulf %91, %arg12 : vector<8x8xf32>
      %cst_46 = arith.constant dense<0.000000e+00> : vector<8x8xf32>
      %93 = tpu.matmul %86, %69, %cst_46 {dimension_numbers = #tpu.dot_dimension_numbers<[1], [0], [0], [1], [0, 0, 1, 1], [], []>} : vector<8x8xf32>, vector<8x8xf32>, vector<8x8xf32> -> vector<8x8xf32>
      %94 = arith.addf %92, %93 : vector<8x8xf32>
      scf.yield %81, %90, %94 : vector<8x1xf32>, vector<8x1xf32>, vector<8x8xf32>
    }
    %43 = tpu.reciprocal %42#1 : vector<8x1xf32> -> vector<8x1xf32>
    %44 = vector.broadcast %43 : vector<8x1xf32> to vector<8x8xf32>
    %45 = arith.mulf %42#2, %44 : vector<8x8xf32>
    %c0_25 = arith.constant 0 : index
    %c16 = arith.constant 16 : index
    %46 = vector.load %arg8[%c0_25, %c16] : memref<8x32xf32, #tpu.memory_space<vmem>>, vector<8x8xf32>
    tpu.vector_store %arg8[%c0_25, %c16], %45 {strides = array<i32>} : memref<8x32xf32, #tpu.memory_space<vmem>>, vector<8x8xf32>,
    %47 = vector.extract_strided_slice %9 {offsets = [0, 24], sizes = [8, 8], strides = [1, 1]} : vector<8x32xf32> to vector<8x8xf32>
    %cst_26 = arith.constant -1.000000e+30 : f32
    %48 = vector.broadcast %cst_26 : f32 to vector<8x1xf32>
    %cst_27 = arith.constant 0.000000e+00 : f32
    %49 = vector.broadcast %cst_27 : f32 to vector<8x1xf32>
    %cst_28 = arith.constant 0.000000e+00 : f32
    %50 = vector.broadcast %cst_28 : f32 to vector<8x8xf32>
    %cst_29 = arith.constant -1.000000e+30 : f32
    %c0_i32_30 = arith.constant 0 : i32
    %51 = arith.subi %13, %c0_i32_30 : i32
    %52 = arith.addi %c0_i32_30, %51 : i32
    %c1_i32_31 = arith.constant 1 : i32
    %53:3 = scf.for %arg9 = %c0_i32_30 to %52 step %c1_i32_31 iter_args(%arg10 = %48, %arg11 = %49, %arg12 = %50) -> (vector<8x1xf32>, vector<8x1xf32>, vector<8x8xf32>)  : i32 {
      %c8_i32_41 = arith.constant 8 : i32
      %64 = arith.muli %arg9, %c8_i32_41 : i32
      %65 = tpu.assume_multiple %64, 8 : i32
      %66 = arith.index_cast %65 : i32 to index
      %c24_42 = arith.constant 24 : index
      %67 = vector.load %arg7[%66, %c24_42] : memref<8x64xf32, #tpu.memory_space<vmem>>, vector<8x8xf32>
      %68 = arith.index_cast %65 : i32 to index
      %c56 = arith.constant 56 : index
      %69 = vector.load %arg7[%68, %c56] : memref<8x64xf32, #tpu.memory_space<vmem>>, vector<8x8xf32>
      %cst_43 = arith.constant dense<0.000000e+00> : vector<8x8xf32>
      %70 = tpu.matmul %47, %67, %cst_43 {dimension_numbers = #tpu.dot_dimension_numbers<[1], [1], [0], [0], [0, 0, 1, 0], [], []>} : vector<8x8xf32>, vector<8x8xf32>, vector<8x8xf32> -> vector<8x8xf32>
      %71 = tpu.iota {dimensions = array<i32: 1>} : vector<1x8xi32>
      %72 = vector.broadcast %65 : i32 to vector<1x8xi32>
      %73 = arith.addi %72, %71 : vector<1x8xi32>
      %74 = vector.broadcast %73 : vector<1x8xi32> to vector<8x8xi32>
      %75 = vector.broadcast %12 : vector<8x1xi32> to vector<8x8xi32>
      %76 = arith.cmpi sle, %74, %75 : vector<8x8xi32>
      %77 = vector.broadcast %cst_29 : f32 to vector<8x8xf32>
      %78 = arith.select %76, %70, %77 : vector<8x8xi1>, vector<8x8xf32>
      %cst_44 = arith.constant dense<0xFF800000> : vector<8xf32>
      %79 = vector.multi_reduction <maximumf>, %78, %cst_44 [1] : vector<8x8xf32> to vector<8xf32>
      %80 = vector.shape_cast %79 : vector<8xf32> to vector<8x1xf32>
      %81 = arith.maximumf %arg10, %80 : vector<8x1xf32>
      %82 = arith.subf %arg10, %81 : vector<8x1xf32>
      %83 = math.exp %82 : vector<8x1xf32>
      %84 = vector.broadcast %81 : vector<8x1xf32> to vector<8x8xf32>
      %85 = arith.subf %78, %84 : vector<8x8xf32>
      %86 = math.exp %85 : vector<8x8xf32>
      %87 = arith.mulf %83, %arg11 : vector<8x1xf32>
      %cst_45 = arith.constant dense<0.000000e+00> : vector<8xf32>
      %88 = vector.multi_reduction <add>, %86, %cst_45 [1] : vector<8x8xf32> to vector<8xf32>
      %89 = vector.shape_cast %88 : vector<8xf32> to vector<8x1xf32>
      %90 = arith.addf %87, %89 : vector<8x1xf32>
      %91 = vector.broadcast %83 : vector<8x1xf32> to vector<8x8xf32>
      %92 = arith.mulf %91, %arg12 : vector<8x8xf32>
      %cst_46 = arith.constant dense<0.000000e+00> : vector<8x8xf32>
      %93 = tpu.matmul %86, %69, %cst_46 {dimension_numbers = #tpu.dot_dimension_numbers<[1], [0], [0], [1], [0, 0, 1, 1], [], []>} : vector<8x8xf32>, vector<8x8xf32>, vector<8x8xf32> -> vector<8x8xf32>
      %94 = arith.addf %92, %93 : vector<8x8xf32>
      scf.yield %81, %90, %94 : vector<8x1xf32>, vector<8x1xf32>, vector<8x8xf32>
    }
    %54 = tpu.reciprocal %53#1 : vector<8x1xf32> -> vector<8x1xf32>
    %55 = vector.broadcast %54 : vector<8x1xf32> to vector<8x8xf32>
    %56 = arith.mulf %53#2, %55 : vector<8x8xf32>
    %c0_32 = arith.constant 0 : index
    %c24 = arith.constant 24 : index
    %57 = vector.load %arg8[%c0_32, %c24] : memref<8x32xf32, #tpu.memory_space<vmem>>, vector<8x8xf32>
    tpu.vector_store %arg8[%c0_32, %c24], %56 {strides = array<i32>} : memref<8x32xf32, #tpu.memory_space<vmem>>, vector<8x8xf32>,
    %c0_33 = arith.constant 0 : index
    %c0_34 = arith.constant 0 : index
    %58 = vector.load %arg8[%c0_33, %c0_34] : memref<8x32xf32, #tpu.memory_space<vmem>>, vector<8x32xf32>
    %c0_35 = arith.constant 0 : index
    %c0_36 = arith.constant 0 : index
    %59 = vector.load %arg5[%c0_35, %c0_36] : memref<32x32xf32, #tpu.memory_space<vmem>>, vector<32x32xf32>
    %cst_37 = arith.constant dense<0.000000e+00> : vector<8x32xf32>
    %60 = tpu.matmul %58, %59, %cst_37 {dimension_numbers = #tpu.dot_dimension_numbers<[1], [0], [0], [1], [0, 0, 1, 1], [], []>} : vector<8x32xf32>, vector<32x32xf32>, vector<8x32xf32> -> vector<8x32xf32>
    %c0_38 = arith.constant 0 : index
    %c0_39 = arith.constant 0 : index
    %c0_40 = arith.constant 0 : index
    %61 = vector.load %arg6[%c0_38, %c0_39, %c0_40] : memref<1x8x32xf32, #tpu.memory_space<vmem>>, vector<1x8x32xf32>
    %62 = vector.shape_cast %61 : vector<1x8x32xf32> to vector<8x32xf32>
    %63 = vector.shape_cast %60 : vector<8x32xf32> to vector<1x8x32xf32>
    tpu.vector_store %arg6[%c0_38, %c0_39, %c0_40], %63 {strides = array<i32>} : memref<1x8x32xf32, #tpu.memory_space<vmem>>, vector<1x8x32xf32>,
    return
  }
  func.func @transform_0(%arg0: i32, %arg1: i32) -> (i32, i32, i32) {
    %c0_i32 = arith.constant 0 : i32
    %c0_i32_0 = arith.constant 0 : i32
    %c0_i32_1 = arith.constant 0 : i32
    return %arg0, %c0_i32, %c0_i32_0 : i32, i32, i32
  }
  func.func @transform_1(%arg0: i32, %arg1: i32) -> (i32, i32) {
    %c0_i32 = arith.constant 0 : i32
    %c0_i32_0 = arith.constant 0 : i32
    %c0_i32_1 = arith.constant 0 : i32
    return %c0_i32, %c0_i32_0 : i32, i32
  }
  func.func @transform_2(%arg0: i32, %arg1: i32) -> (i32, i32) {
    %c0_i32 = arith.constant 0 : i32
    %c0_i32_0 = arith.constant 0 : i32
    %c0_i32_1 = arith.constant 0 : i32
    return %c0_i32, %c0_i32_0 : i32, i32
  }
  func.func @transform_3(%arg0: i32, %arg1: i32) -> (i32, i32) {
    %c0_i32 = arith.constant 0 : i32
    %c0_i32_0 = arith.constant 0 : i32
    %c0_i32_1 = arith.constant 0 : i32
    return %c0_i32, %c0_i32_0 : i32, i32
  }
  func.func @transform_4(%arg0: i32, %arg1: i32) -> (i32, i32, i32) {
    %c0_i32 = arith.constant 0 : i32
    %c0_i32_0 = arith.constant 0 : i32
    return %arg0, %arg1, %c0_i32 : i32, i32, i32
  }
}

</mosaic_0001>

<bundles_post_ra>
// kernel: tpu_custom_call.1
= control target key start
LH: loop header
LB: loop body
LE: loop exit
PB: predicated region body
PF: predicated region fallthrough
CT: control target
= control target key end

     0   :  { %9 = vsyncpa [#allocation5], 0  ;;  %s2732_s0 = inlined_call_operand.hbm [shape: f32[2,8,32], index: 0, kind: input, shape index: {}]   ;;  %s2733_s1 = inlined_call_operand.hbm [shape: f32[32,32], index: 1, kind: input, shape index: {}]   ;;  %s2734_s2 = inlined_call_operand.hbm [shape: f32[32,64], index: 2, kind: input, shape index: {}]   ;;  %s2735_s3 = inlined_call_operand.hbm [shape: f32[32,32], index: 3, kind: input, shape index: {}]   ;;  %s2736_s4 = inlined_call_operand.hbm [shape: f32[2,8,32], index: 4, kind: output, shape index: {}]  }
   0x1   :  { %11 = vsyncpa [#allocation5 + $0x1], 0 }
   0x2   :  { %12 = vsyncpa [#allocation8], 0 }
   0x3   :  { %13 = vsyncpa [#allocation11], 0 }
   0x4   :  { %14 = vsyncpa [#allocation6], 0 }
   0x5   :  { %16 = vsyncpa [#allocation6 + $0x1], 0  ;;  %s2314_s15 = smov 0   ;;  %s2316_s16 = smov 0  }
   0x6   :  { %s2318_s17 = smov 0   ;;  %s2320_s18 = smov 0  }
   0x7   :  { %s2322_s19 = smov 0   ;;  %s2324_s20 = smov 0  }
   0x8 LB: > { %s1499_s21 = sadd.s32 4294967295, %s2195_s20   ;;  %s1500_s22 = sadd.s32 4294967294, %s2195_s20   ;;  %s2195_s20 = sphi %s2324_s20, %s22_s20   ;;  %s2191_s19 = sphi %s2322_s19, %s2769_s19   ;;  %s2187_s18 = sphi %s2320_s18, %s2768_s18   ;;  %s2183_s17 = sphi %s2318_s17, %s2767_s17   ;;  %s2179_s16 = sphi %s2316_s16, %s2766_s16   ;;  %s2175_s15 = sphi %s2314_s15, %s2765_s15  }
   0x9   : > { %p54_p0 = scmp.ne.s32.totalorder %s2179_s16, %s2175_s15  ;;  %p2348_p1 = scmp.eq.s32.totalorder %s1499_s21, 0 }
   0xa   : > { %p2352_p2 = scmp.eq.s32.totalorder %s1499_s21, 1  ;;  %p149_p3 = scmp.eq.s32.totalorder %s1500_s22, 1 }
   0xb   : > { %s2742_s23 = scalar_select %p2348_p1, 1, 0 }
   0xc   : > { %s2743_s24 = scalar_select %p2352_p2, 1, 0 }
   0xd   : > { %p2358_p4 = por %p2348_p1, %p54_p0  ;;  %p1501_p5 = scmp.ge.s32.totalorder %s2195_s20, 1 }
   0xe   : > { %p2363_p6 = por %p149_p3, %p54_p0  ;;  %p156_p7 = scmp.lt.s32.totalorder %s2195_s20, 3 }
   0xf   : > { %s2744_s25 = scalar_select %p2358_p4, 1, 0 }
  0x10   : > { %s2745_s26 = scalar_select %p2363_p6, 1, 0 }
  0x11   : > { %p2368_p8 = pnand %p1501_p5, %p156_p7  ;;  %s2261_s28 = smov [#allocation7]  }
  0x12   : > { %2746 = sst [smem:[#allocation17_spill]] %s2745_s26  ;;  %s168_s29 = sshll.u32 %s2261_s28, 4  ;;  %s2372_s29 = int_to_ptr.vmem [resolvable:$true] %s168_s29 }
  0x13   : > { %s2747_s27 = scalar_select %p2368_p8, 1, 0 }
  0x14   : > { %p1675_p9 = pneg %p2368_p8  ;;  %s2262_s5 = smov [#allocation9]  }
  0x15   : > { %s181_s6 = sshll.u32 %s2262_s5, 4  ;;  %s2263_s7 = smov [#allocation10]   ;;  %s2383_s6 = int_to_ptr.vmem [resolvable:$true] %s181_s6 }
  0x16   : > { %p2379_p11 = pnand %p1675_p9, %p2348_p1  ;;  %s2385_s8 = sshll.u32 %s2263_s7, 4  ;;  %s195_s8 = int_to_ptr.vmem [resolvable:$true] %s2385_s8 }
  0x17   : > { %s1927_s11 = scalar_lea.hbm %s2733_s1, 512 }
  0x18   : > { %p1928_p12 = scmp.ne.s32.totalorder %s2733_s1, %s1927_s11  ;;  %p2395_p13 = pneg %p2379_p11 }
  0x19   : > { %p1934_p5 = scmp.lt.u32.totalorder %s1927_s11, %s2733_s1 }
  0x1a   : > { %p1930_p0 = pnand %p2395_p13, %p1928_p12 }
  0x1c   : > { %p1931_p3 = pneg %p1930_p0 }
  0x1e   : > { %p1936_p7 = pnand %p1934_p5, %p1931_p3 }
  0x20   : > { %1939 = shalt.err (!%p1936_p7)
}
  0x21   : > { %s1940_s28 = scalar_lea.vmem %s2372_s29, 512  ;;  %p1948_p1 = scmp.lt.s32.totalorder %s2372_s29, %s2372_s29 }
  0x22   : > { %p1941_p9 = scmp.ne.s32.totalorder %s2372_s29, %s1940_s28  ;;  %p1949_p4 = scmp.lt.s32.totalorder %s1940_s28, %s1940_s28 }
  0x24   : > { %p1943_p10 = pnand %p1941_p9, %p2395_p13  ;;  %p1950_p12 = por %p1949_p4, %p1948_p1 }
  0x26   : > { %p1944_p6 = pneg %p1943_p10 }
  0x28   : > { %p1951_p0 = pnand %p1950_p12, %p1944_p6 }
  0x2a   : > { %1954 = shalt.err (!%p1951_p0)
}
  0x2b   : > { %s2264_s5 = smov 128   ;;  %s2265_s7 = smov 8  }
  0x2c   : > { %1678 = dma.hbm_to_vmem [thread:$0]  (!%p2379_p11), %s2733_s1, 512, %s2372_s29, [#allocation8], %s2264_s5, %s2264_s5, %s2265_s7  }
  0x2d   : > { %s1955_s13 = scalar_lea.hbm %s2734_s2, 512 }
  0x2e   : > { %p1956_p1 = scmp.ne.s32.totalorder %s2734_s2, %s1955_s13  ;;  %p1962_p10 = scmp.lt.u32.totalorder %s1955_s13, %s2734_s2 }
  0x30   : > { %p1958_p4 = pnand %p1956_p1, %p2395_p13 }
  0x32   : > { %p1959_p6 = pneg %p1958_p4 }
  0x34   : > { %p1964_p3 = pnand %p1962_p10, %p1959_p6 }
  0x36   : > { %1967 = shalt.err (!%p1964_p3)
}
  0x37   : > { %s1968_s29 = scalar_lea.vmem %s2383_s6, 512  ;;  %p1976_p12 = scmp.lt.s32.totalorder %s2383_s6, %s2383_s6 }
  0x38   : > { %p1969_p5 = scmp.ne.s32.totalorder %s2383_s6, %s1968_s29  ;;  %p1977_p0 = scmp.lt.s32.totalorder %s1968_s29, %s1968_s29 }
  0x3a   : > { %p1971_p7 = pnand %p1969_p5, %p2395_p13  ;;  %p1978_p1 = por %p1977_p0, %p1976_p12 }
  0x3c   : > { %p1972_p9 = pneg %p1971_p7 }
  0x3e   : > { %p1979_p4 = pnand %p1978_p1, %p1972_p9 }
  0x40   : > { %1982 = shalt.err (!%p1979_p4)
}
  0x41   : > { %1681 = dma.hbm_to_vmem [thread:$0]  (!%p2379_p11), %s2734_s2, 512, %s2383_s6, [#allocation8], %s2264_s5, %s2264_s5, %s2265_s7  }
  0x42   : > { %s1983_s12 = scalar_lea.hbm %s2735_s3, 512 }
  0x43   : > { %p1984_p6 = scmp.ne.s32.totalorder %s2735_s3, %s1983_s12  ;;  %p1990_p5 = scmp.lt.u32.totalorder %s1983_s12, %s2735_s3 }
  0x45   : > { %p1986_p10 = pnand %p1984_p6, %p2395_p13 }
  0x47   : > { %p1987_p3 = pneg %p1986_p10 }
  0x49   : > { %p1992_p7 = pnand %p1990_p5, %p1987_p3 }
  0x4b   : > { %1995 = shalt.err (!%p1992_p7)
}
  0x4c   : > { %s1996_s29 = scalar_lea.vmem %s195_s8, 512  ;;  %p2004_p1 = scmp.lt.s32.totalorder %s195_s8, %s195_s8 }
  0x4d   : > { %p1997_p9 = scmp.ne.s32.totalorder %s195_s8, %s1996_s29  ;;  %p2005_p4 = scmp.lt.s32.totalorder %s1996_s29, %s1996_s29 }
  0x4f   : > { %p1999_p12 = pnand %p1997_p9, %p2395_p13  ;;  %p2006_p8 = por %p2005_p4, %p2004_p1 }
  0x51   : > { %p2000_p0 = pneg %p1999_p12 }
  0x53   : > { %p2007_p2 = pnand %p2006_p8, %p2000_p0 }
  0x55   : > { %2010 = shalt.err (!%p2007_p2)
}
  0x56   : > { %1684 = dma.hbm_to_vmem [thread:$0]  (!%p2379_p11), %s2735_s3, 512, %s195_s8, [#allocation11], %s2264_s5, %s2264_s5, %s2265_s7  }
  0x57   : > { %s41_s14 = sadd.s32 1, %s2183_s17  ;;  %s34_s30 = sadd.s32 1, %s2191_s19 }
  0x58   : > { %p48_p2 = scmp.ne.s32.totalorder %s2183_s17, %s2179_s16  ;;  %p36_p8 = scmp.ge.s32.totalorder %s34_s30, 2 }
  0x59   : > { %p49_p13 = scmp.eq.s32.totalorder %s2195_s20, 0  ;;  %p2750_p6 = scmp.ne.s32.totalorder %s2743_s24, 0 }
  0x5a   : > { %p1696_p3 = scmp.lt.s32.totalorder %s2195_s20, 2  ;;  %s2771_s30 = smov (%p36_p8, %s34_s30), 0 }
  0x5b   : > { %p2474_p10 = por %p2750_p6, %p48_p2  ;;  %p50_p5 = por %p49_p13, %p48_p2 }
  0x5c   : > { %s208_s10 = sand.u32 1, %s2183_s17   ;;  %s38_s11 = ssub.s32 %s2191_s19, %s2771_s30 }
  0x5d   : > { %p39_p7 = scmp.eq.s32.totalorder %s38_s11, 0  ;;  %s1506_s8 = sshll.u32 %s208_s10, 3 }
  0x5e   : > { %s1507_s5 = sshll.u32 %s2191_s19, 7  ;;  %s212_s21 = scalar_lea.vmem [#allocation4], %s1506_s8 }
  0x5f   : > { %s2486_s7 = scalar_select %p39_p7, %s2183_s17, %s41_s14  }
  0x60   : > { %s2491_s24 = scalar_lea.hbm %s2732_s0, %s1507_s5  ;;  %s219_s22 = sshll.u32 %s212_s21, 4  ;;  %s2493_s22 = int_to_ptr.vmem [resolvable:$true] %s219_s22 }
  0x61   : > { %p2497_p11 = pnand %p1696_p3, %p50_p5  ;;  %s209_s29 = scalar_lea.sflag [#allocation5], %s208_s10 }
  0x62   : > { %s2011_s6 = scalar_lea.hbm %s2491_s24, 128  ;;  %s2016_s11 = scalar_lea.hbm %s2732_s0, 256 }
  0x63   : > { %p2012_p9 = scmp.ne.s32.totalorder %s2491_s24, %s2011_s6  ;;  %p2013_p12 = pneg %p2497_p11 }
  0x64   : > { %p2017_p4 = scmp.lt.u32.totalorder %s2491_s24, %s2732_s0  ;;  %p2018_p2 = scmp.lt.u32.totalorder %s2016_s11, %s2011_s6 }
  0x65   : > { %p2014_p0 = pnand %p2013_p12, %p2012_p9  ;;  %p2020_p13 = scmp.lt.u32.totalorder %s2011_s6, %s2491_s24 }
  0x66   : > { %p2019_p8 = por %p2018_p2, %p2017_p4 }
  0x67   : > { %p2015_p1 = pneg %p2014_p0 }
  0x68   : > { %p2021_p6 = por %p2020_p13, %p2019_p8 }
  0x6a   : > { %p2022_p3 = pnand %p2021_p6, %p2015_p1 }
  0x6c   : > { %2025 = shalt.err (!%p2022_p3)
}
  0x6d   : > { %s2026_s10 = scalar_lea.vmem %s2493_s22, 128  ;;  %s2266_s12 = smov [#allocation4]  }
  0x6e   : > { %p2027_p5 = scmp.ne.s32.totalorder %s2493_s22, %s2026_s10  ;;  %s2031_s13 = sshll.u32 %s2266_s12, 4  ;;  %s2032_s13 = int_to_ptr.vmem [resolvable:$false] %s2031_s13 }
  0x6f   : > { %s2033_s21 = scalar_lea.vmem %s2032_s13, 256  ;;  %p2034_p0 = scmp.lt.s32.totalorder %s2493_s22, %s2032_s13 }
  0x70   : > { %p2029_p7 = pnand %p2027_p5, %p2013_p12  ;;  %p2035_p4 = scmp.lt.s32.totalorder %s2033_s21, %s2026_s10 }
  0x72   : > { %p2030_p9 = pneg %p2029_p7  ;;  %p2036_p2 = por %p2035_p4, %p2034_p0 }
  0x74   : > { %p2037_p8 = pnand %p2036_p2, %p2030_p9 }
  0x76   : > { %2040 = shalt.err (!%p2037_p8)
}
  0x77   : > { %1688 = dma.hbm_to_vmem [thread:$0]  (!%p2497_p11), %s2491_s24, 128, %s2493_s22, %s209_s29  }
  0x78   : > { %p2753_p1 = scmp.ne.s32.totalorder %s2747_s27, 0 }
  0x79   : > { %s2529_s6 = sand.u32 (!%p2753_p1), 1, %s2179_s16   ;;  %p2754_p12 = scmp.ne.s32.totalorder (!%p2753_p1), %s2744_s25, 0 }
  0x7a   : > { %228 = sbr.rel (%p2753_p1) target bundleno = 3673 (0xe59), region = 36  ;;  %s1509_s26 = sshll.u32 (!%p2753_p1), %s2529_s6, 3 }
  0x7b   : > { %s231_s14 = scalar_lea.sflag (!%p2753_p1), [#allocation5], %s2529_s6  ;;  %s2535_s11 = scalar_lea.vmem (!%p2753_p1), [#allocation4], %s1509_s26 }
  0x81   : > { %2158 = dma.done.wait (%p2754_p12), %s231_s14, 128  }
  0x82   : > { %2160 = vsyncadd (%p2754_p12), %s231_s14, 4294967168  ;;  %p2755_p11 = scmp.ne.s32.totalorder %s2742_s23, 0 }
  0x84   : > { %2162 = dma.done.wait (%p2755_p11), [#allocation8], 1024  }
  0x85   : > { %2164 = vsyncadd (%p2755_p11), [#allocation8], 4294966272 }
  0x86   : > { %2166 = dma.done.wait (%p2755_p11), [#allocation11], 512  }
  0x87   : > { %2168 = vsyncadd (%p2755_p11), [#allocation11], 4294966784  ;;  %v2267_v0 = vmov 0.0|0.0   ;;  %vm2268_vm0 = vmmov 0   ;;  %v2269_v1 = vmov 0.0   ;;  %v276_v2 = vld [vmem:[#allocation9] sm:$0xff]  ;;  %v437_v15 = vlaneseq }
  0x88   : > { %1641 = vmatprep.subr.bf16.mxu0 %v2267_v0  ;;  %1647 = vmatprep.subr.bf16.mxu1 %v2267_v0  ;;  %v277_v3 = vld [vmem:[#allocation9 + $0x8] sm:$0xff]  ;;  %v359_v4 = vld [vmem:[#allocation7] sm:$0xff]  ;;  %v278_v7 = vld [vmem:[#allocation9 + $0x10] sm:$0xff]  ;;  %vm280_vm1 = vcmask 261120   ;;  %vm354_vm2 = vcmask 523264   ;;  %s2567_s23 = scalar_lea.vmem [#allocation12], %s1509_s26 }
  0x89   : > { %1576 = vmatprep.mubr.msk.f32.mxu0 %vm2268_vm0, %v2269_v1  ;;  %1587 = vmatprep.mubr.msk.f32.mxu1 %vm2268_vm0, %v2269_v1  ;;  %v1642_v5 = vpack.c.bf16 %v277_v3, %v276_v2  ;;  %v360_v6 = vld [vmem:[#allocation7 + $0x8] sm:$0xff]  ;;  %v279_v8 = vld [vmem:[#allocation9 + $0x18] sm:$0xff]  ;;  %v361_v10 = vld [vmem:[#allocation7 + $0x10] sm:$0xff]  ;;  %v2561_v16 = vshrl.u32 %v437_v15, 7  ;;  %v2197_v21 = vmov 0.0   ;;  %v2201_v22 = vmov 0.0  }
  0x8a   : > { %v1648_v9 = vpack.c.bf16 %v360_v6, %v359_v4  ;;  %v362_v11 = vld [vmem:[#allocation7 + $0x18] sm:$0xff]  ;;  %v1645_v12 = vpack.c.bf16 %v279_v8, %v278_v7  ;;  %v2205_v23 = vmov -1e+30   ;;  %s2569_s25 = smov 0  }
  0x8b   : > { %1643 = vmatpush3.bf16.msra.mxu0 %v1642_v5  ;;  %v1651_v13 = vpack.c.bf16 %v362_v11, %v361_v10  ;;  %v275_v14 = vld [vmem:[%s2535_s11] sm:$0xff] }
  0x8c   : > { %1649 = vmatpush3.bf16.msra.mxu1 %v1648_v9  ;;  %1644 = vmatprep.subr.bf16.mxu0 %v2267_v0 }
  0x8d   : > { %1650 = vmatprep.subr.bf16.mxu1 %v2267_v0 }
  0x8f   : > { %1646 = vmatpush3.bf16.msra.mxu0 %v1645_v12 }
  0x90   : > { %1652 = vmatpush3.bf16.msra.mxu1 %v1651_v13 }
  0x92   : > { %1577 = vmatmul.mubr.msk.f32.vlgmr.msra.gmra.mrb[0].mxu0 %vm280_vm1, %v275_v14 }
  0x93   : > { %1588 = vmatmul.mubr.msk.f32.vlgmr.msra.gmra.mrb[0].mxu1 %vm280_vm1, %v275_v14 }
 0x165   : > { %v350_v17 = vpop.f32.mrb[0].mxu0 }
 0x166   : > { %355 = vst.msk [vmem:[#allocation2] sm:$0xff] %vm354_vm2, %v350_v17  ;;  %v2563_v18 = vpop.f32.mrb[0].mxu1  ;;  %v1578_v19 = vpop.f32.mrb[1].mxu0 }
 0x167   : > { %v1589_v20 = vpop.f32.mrb[1].mxu1 }
 0x168 LB: >> { %v2270_v24 = vmov 0.0   ;;  %vm2271_vm3 = vmmov 0   ;;  %s1516_s27 = sshll.u32 %s2211_s25, 3  ;;  %vm454_vm4 = vcmask 64512   ;;  %v2579_v26 = vand.u32 127, %v437_v15  ;;  %s2272_s22 = smov 96   ;;  %s2211_s25 = sphi %s2569_s25, %s445_s25   ;;  %v2207_v23 = vphi %v2205_v23, %v2206_v23   ;;  %v2203_v22 = vphi %v2201_v22, %v2202_v22   ;;  %v2199_v21 = vphi %v2197_v21, %v2198_v21  }
 0x169   : >> { %1590 = vmatprep.subr.mxu0 %v2270_v24  ;;  %1592 = vmatprep.mubr.msk.f32.mxu0 %vm2271_vm3, %v2270_v24  ;;  %s452_s24 = scalar_lea.vmem [#allocation2], %s1516_s27  ;;  %v533_v27 = vstv %s1516_s27  ;;  %s445_s25 = sadd.s32 1, %s2211_s25  }
 0x16a   : >> { %1595 = vmatprep.subr.mxu1 %v2270_v24  ;;  %1597 = vmatprep.mubr.msk.f32.mxu1 %vm2271_vm3, %v2270_v24  ;;  %v534_v28 = vadd.s32 %v533_v27, %v2579_v26  ;;  %p444_p13 = scmp.ge.s32.totalorder %s445_s25, 1 }
 0x16b   : > { %v2590_v52 = vmov (%p444_p13), 0.0   ;;  %v2592_v53 = vmov (%p444_p13), 0.0   ;;  %v2221_v54 = vmov (%p444_p13), -1e+30   ;;  %s2594_s28 = smov (%p444_p13), 0  }
 0x16c   : >> { %vm535_vm5 = vcmp.le.s32.totalorder %v534_v28, %v2561_v16 }
 0x16d   : >> { %v453_v25 = vld [vmem:[%s452_s24] sm:$0xff] }
 0x16e   : >> { %1591 = vmatpush3.xpose.msk.msra.mxu0 %vm454_vm4, %v453_v25 }
 0x171   : >> { %1593 = vmatmul.mubr.msk.f32.vlgmr.msra.gmra.mrb[0].mxu0 %vm454_vm4, %v2563_v18 }
 0x244   : >> { %v527_v29 = vpop.f32.mrb[0].mxu0 }
 0x245   : >> { %v536_v30 = vsel %vm535_vm5, %v527_v29, -1e+30  ;;  %v1594_v31 = vpop.f32.mrb[1].mxu0 }
 0x246   : >> { %v537_v32 = vsel %vm454_vm4, %v536_v30, -inf }
 0x247   : >> { %538 = vmax.xlane.f32.xlu0 %v537_v32 }
 0x25d   : >> { %553 = vrot.lane.b32.xlu0 %v453_v25, %s2272_s22 }
 0x2d4   : >> { %v539_v33 = vpop.xlane.xlu0 %538 }
 0x2d5   : >> { %v540_v34 = vmax.f32 %v2207_v23, %v539_v33  }
 0x2d7   : >> { %v541_v35 = vsub.f32 %v2207_v23, %v540_v34  ;;  %v544_v36 = vsub.f32 %v536_v30, %v540_v34  ;;  %v2206_v23 = vmov %v540_v34  }
 0x2d8   : >> { %v554_v37 = vpop.permute.xlu0 %553 }
 0x2d9   : >> { %v545_v38 = vmul.f32 1.442695, %v544_v36  ;;  %1596 = vmatpush3.msra.mxu1 %v554_v37  ;;  %v542_v41 = vmul.f32 1.442695, %v541_v35 }
 0x2db   : >> { %1903 = vpow2.f32 %v545_v38 }
 0x2dc   : >> { %1905 = vpow2.f32 %v542_v41 }
 0x2e5   : >> { %v1904_v39 = vpop.eup %1903 }
 0x2e6   : >> { %1598 = vmatmul.mubr.msk.f32.vlgmr.msra.gmra.mrb[0].mxu1 %vm454_vm4, %v1904_v39  ;;  %v548_v40 = vsel %vm454_vm4, %v1904_v39, 0.0  ;;  %v1906_v42 = vpop.eup %1905 }
 0x2e7   : >> { %549 = vadd.xlane.f32.xlu1 %v548_v40  ;;  %v547_v43 = vmul.f32 %v2203_v22, %v1906_v42  ;;  %v552_v46 = vmul.f32 %v2199_v21, %v1906_v42 }
 0x374   : >> { %v550_v44 = vpop.xlane.xlu1 %549 }
 0x375   : >> { %v551_v45 = vadd.f32 %v550_v44, %v547_v43  }
 0x377   : >> { %v2202_v22 = vmov %v551_v45   ;;  %1907 = vrcp.f32 (%p444_p13), %v551_v45 }
 0x381   : > { %v1908_v50 = vpop.eup (%p444_p13), %1907 }
 0x3b6   : > { %447 = sbr.rel (!%p444_p13) target bundleno = 360 (0x168), region = 130 }
 0x3b9   : >> { %v625_v47 = vpop.f32.mrb[0].mxu1 }
 0x3ba   : >> { %v629_v48 = vadd.f32 %v625_v47, %v552_v46   ;;  %v1599_v49 = vpop.f32.mrb[1].mxu1 }
 0x3bc   : >> { %v2198_v21 = vmov %v629_v48   ;;  %v631_v51 = vmul.f32 (%p444_p13), %v1908_v50, %v629_v48 }
 0x3be   : > { %633 = vst.msk [vmem:[#allocation3] sm:$0xff] %vm454_vm4, %v631_v51 }
 0x3bf LB: >> { %v2273_v55 = vmov 0.0   ;;  %vm2274_vm6 = vmmov 0   ;;  %s1520_s29 = sshll.u32 %s2227_s28, 3  ;;  %s2275_s5 = smov 120   ;;  %s2227_s28 = sphi %s2594_s28, %s637_s28   ;;  %v2223_v54 = vphi %v2221_v54, %v2222_v54   ;;  %v2219_v53 = vphi %v2592_v53, %v2757_v53   ;;  %v2215_v52 = vphi %v2590_v52, %v2756_v52  }
 0x3c0   : >> { %1600 = vmatprep.subr.mxu0 %v2273_v55  ;;  %1602 = vmatprep.mubr.msk.f32.mxu0 %vm2274_vm6, %v2273_v55  ;;  %s644_s8 = scalar_lea.vmem [#allocation2], %s1520_s29  ;;  %v728_v59 = vstv %s1520_s29  ;;  %s2276_s10 = smov 88  }
 0x3c1   : >> { %1605 = vmatprep.subr.mxu1 %v2273_v55  ;;  %1607 = vmatprep.mubr.msk.f32.mxu1 %vm2274_vm6, %v2273_v55  ;;  %v645_v56 = vld [vmem:[%s644_s8] sm:$0xff]  ;;  %v729_v60 = vadd.s32 %v728_v59, %v2579_v26  ;;  %s637_s28 = sadd.s32 1, %s2227_s28  }
 0x3c2   : >> { %650 = vrot.lane.b32.xlu0 %v645_v56, %s2275_s5  ;;  %p636_p6 = scmp.ge.s32.totalorder %s637_s28, 1 }
 0x3c3   : >> { %vm730_vm7 = vcmp.le.s32.totalorder %v729_v60, %v2561_v16  ;;  %s2277_s12 = smov (%p636_p6), 8   ;;  %vm831_vm8 = vcmask (%p636_p6), 130112   ;;  %v2617_v25 = vmov (%p636_p6), 0.0   ;;  %v2619_v27 = vmov (%p636_p6), 0.0   ;;  %s2621_s13 = smov (%p636_p6), 0  }
 0x3c4   : > { %v2237_v28 = vmov (%p636_p6), -1e+30  }
 0x3c6   : >> { %647 = vrot.lane.b32.xlu0 %v2563_v18, %s2275_s5 }
 0x434   : >> { %v651_v57 = vpop.permute.xlu0 %650 }
 0x435   : >> { %1601 = vmatpush3.xpose.msk.msra.mxu0 %vm454_vm4, %v651_v57 }
 0x438   : >> { %v648_v58 = vpop.permute.xlu0 %647 }
 0x439   : >> { %1603 = vmatmul.mubr.msk.f32.vlgmr.msra.gmra.mrb[0].mxu0 %vm454_vm4, %v648_v58 }
 0x50c   : >> { %v722_v61 = vpop.f32.mrb[0].mxu0 }
 0x50d   : >> { %v731_v62 = vsel %vm730_vm7, %v722_v61, -1e+30  ;;  %v1604_v63 = vpop.f32.mrb[1].mxu0 }
 0x50e   : >> { %v732_v2 = vsel %vm454_vm4, %v731_v62, -inf }
 0x50f   : >> { %733 = vmax.xlane.f32.xlu1 %v732_v2 }
 0x520   : >> { %748 = vrot.lane.b32.xlu1 %v645_v56, %s2276_s10 }
 0x59c   : >> { %v734_v3 = vpop.xlane.xlu1 %733 }
 0x59d   : >> { %v735_v4 = vmax.f32 %v2223_v54, %v734_v3  }
 0x59f   : >> { %v736_v5 = vsub.f32 %v2223_v54, %v735_v4  ;;  %v739_v6 = vsub.f32 %v731_v62, %v735_v4  ;;  %v2222_v54 = vmov %v735_v4  }
 0x5a0   : >> { %v749_v7 = vpop.permute.xlu1 %748 }
 0x5a1   : >> { %v740_v8 = vmul.f32 1.442695, %v739_v6  ;;  %1606 = vmatpush3.msra.mxu1 %v749_v7  ;;  %v737_v11 = vmul.f32 1.442695, %v736_v5 }
 0x5a3   : >> { %1909 = vpow2.f32 %v740_v8 }
 0x5a4   : >> { %1911 = vpow2.f32 %v737_v11 }
 0x5ad   : >> { %v1910_v9 = vpop.eup %1909 }
 0x5ae   : >> { %1608 = vmatmul.mubr.msk.f32.vlgmr.msra.gmra.mrb[0].mxu1 %vm454_vm4, %v1910_v9  ;;  %v743_v10 = vsel %vm454_vm4, %v1910_v9, 0.0  ;;  %v1912_v12 = vpop.eup %1911 }
 0x5af   : >> { %744 = vadd.xlane.f32.xlu0 %v743_v10  ;;  %v742_v13 = vmul.f32 %v2219_v53, %v1912_v12  ;;  %v747_v17 = vmul.f32 %v2215_v52, %v1912_v12 }
 0x63c   : >> { %v745_v14 = vpop.xlane.xlu0 %744 }
 0x63d   : >> { %v746_v15 = vadd.f32 %v745_v14, %v742_v13  }
 0x63f   : >> { %v2757_v53 = vmov %v746_v15  ;;  %1913 = vrcp.f32 (%p636_p6), %v746_v15 }
 0x649   : > { %v1914_v22 = vpop.eup (%p636_p6), %1913 }
 0x67e   : > { %639 = sbr.rel (!%p636_p6) target bundleno = 959 (0x3bf), region = 141 }
 0x681   : >> { %v820_v19 = vpop.f32.mrb[0].mxu1 }
 0x682   : >> { %v824_v20 = vadd.f32 %v820_v19, %v747_v17   ;;  %v1609_v21 = vpop.f32.mrb[1].mxu1 }
 0x684   : >> { %v2756_v52 = vmov %v824_v20  ;;  %v826_v23 = vmul.f32 (%p636_p6), %v1914_v22, %v824_v20 }
 0x686   : > { %828 = vrot.lane.b32.xlu0 %v826_v23, %s2277_s12 }
 0x6f8   : > { %v829_v24 = vpop.permute.xlu0 %828 }
 0x6f9   : > { %832 = vst.msk [vmem:[#allocation3] sm:$0xff] %vm831_vm8, %v829_v24 }
 0x6fa LB: >> { %v2278_v29 = vmov 0.0   ;;  %vm2279_vm9 = vmmov 0   ;;  %s1524_s21 = sshll.u32 %s2243_s13, 3  ;;  %s2280_s14 = smov 112   ;;  %s2243_s13 = sphi %s2621_s13, %s836_s13   ;;  %v2239_v28 = vphi %v2237_v28, %v2238_v28   ;;  %v2235_v27 = vphi %v2619_v27, %v2759_v27   ;;  %v2231_v25 = vphi %v2617_v25, %v2758_v25  }
 0x6fb   : >> { %1610 = vmatprep.subr.mxu0 %v2278_v29  ;;  %1612 = vmatprep.mubr.msk.f32.mxu0 %vm2279_vm9, %v2278_v29  ;;  %s843_s26 = scalar_lea.vmem [#allocation2], %s1524_s21  ;;  %v927_v33 = vstv %s1524_s21  ;;  %s2281_s11 = smov 80  }
 0x6fc   : >> { %1615 = vmatprep.subr.mxu1 %v2278_v29  ;;  %1617 = vmatprep.mubr.msk.f32.mxu1 %vm2279_vm9, %v2278_v29  ;;  %v844_v30 = vld [vmem:[%s843_s26] sm:$0xff]  ;;  %v928_v34 = vadd.s32 %v927_v33, %v2579_v26  ;;  %s836_s13 = sadd.s32 1, %s2243_s13  }
 0x6fd   : >> { %849 = vrot.lane.b32.xlu0 %v844_v30, %s2280_s14  ;;  %p835_p3 = scmp.ge.s32.totalorder %s836_s13, 1 }
 0x6fe   : >> { %vm929_vm10 = vcmp.le.s32.totalorder %v928_v34, %v2561_v16  ;;  %s2282_s25 = smov (%p835_p3), 16   ;;  %vm1030_vm11 = vcmask (%p835_p3), 195712   ;;  %v2644_v59 = vmov (%p835_p3), 0.0   ;;  %v2646_v60 = vmov (%p835_p3), 0.0   ;;  %s2648_s27 = smov (%p835_p3), 0  }
 0x6ff   : > { %v2253_v61 = vmov (%p835_p3), -1e+30  }
 0x701   : >> { %846 = vrot.lane.b32.xlu0 %v2563_v18, %s2280_s14 }
 0x76f   : >> { %v850_v31 = vpop.permute.xlu0 %849 }
 0x770   : >> { %1611 = vmatpush3.xpose.msk.msra.mxu0 %vm454_vm4, %v850_v31 }
 0x773   : >> { %v847_v32 = vpop.permute.xlu0 %846 }
 0x774   : >> { %1613 = vmatmul.mubr.msk.f32.vlgmr.msra.gmra.mrb[0].mxu0 %vm454_vm4, %v847_v32 }
 0x847   : >> { %v921_v35 = vpop.f32.mrb[0].mxu0 }
 0x848   : >> { %v930_v36 = vsel %vm929_vm10, %v921_v35, -1e+30  ;;  %v1614_v37 = vpop.f32.mrb[1].mxu0 }
 0x849   : >> { %v931_v38 = vsel %vm454_vm4, %v930_v36, -inf }
 0x84a   : >> { %932 = vmax.xlane.f32.xlu1 %v931_v38 }
 0x85b   : >> { %947 = vrot.lane.b32.xlu1 %v844_v30, %s2281_s11 }
 0x8d7   : >> { %v933_v39 = vpop.xlane.xlu1 %932 }
 0x8d8   : >> { %v934_v40 = vmax.f32 %v2239_v28, %v933_v39  }
 0x8da   : >> { %v935_v41 = vsub.f32 %v2239_v28, %v934_v40  ;;  %v938_v42 = vsub.f32 %v930_v36, %v934_v40  ;;  %v2238_v28 = vmov %v934_v40  }
 0x8db   : >> { %v948_v43 = vpop.permute.xlu1 %947 }
 0x8dc   : >> { %v939_v44 = vmul.f32 1.442695, %v938_v42  ;;  %1616 = vmatpush3.msra.mxu1 %v948_v43  ;;  %v936_v47 = vmul.f32 1.442695, %v935_v41 }
 0x8de   : >> { %1915 = vpow2.f32 %v939_v44 }
 0x8df   : >> { %1917 = vpow2.f32 %v936_v47 }
 0x8e8   : >> { %v1916_v45 = vpop.eup %1915 }
 0x8e9   : >> { %1618 = vmatmul.mubr.msk.f32.vlgmr.msra.gmra.mrb[0].mxu1 %vm454_vm4, %v1916_v45  ;;  %v942_v46 = vsel %vm454_vm4, %v1916_v45, 0.0  ;;  %v1918_v48 = vpop.eup %1917 }
 0x8ea   : >> { %943 = vadd.xlane.f32.xlu0 %v942_v46  ;;  %v941_v49 = vmul.f32 %v2235_v27, %v1918_v48  ;;  %v946_v52 = vmul.f32 %v2231_v25, %v1918_v48 }
 0x977   : >> { %v944_v50 = vpop.xlane.xlu0 %943 }
 0x978   : >> { %v945_v51 = vadd.f32 %v944_v50, %v941_v49  }
 0x97a   : >> { %v2759_v27 = vmov %v945_v51  ;;  %1919 = vrcp.f32 (%p835_p3), %v945_v51 }
 0x984   : > { %v1920_v56 = vpop.eup (%p835_p3), %1919 }
 0x9b9   : > { %838 = sbr.rel (!%p835_p3) target bundleno = 1786 (0x6fa), region = 152 }
 0x9bc   : >> { %v1019_v53 = vpop.f32.mrb[0].mxu1 }
 0x9bd   : >> { %v1023_v54 = vadd.f32 %v1019_v53, %v946_v52   ;;  %v1619_v55 = vpop.f32.mrb[1].mxu1 }
 0x9bf   : >> { %v2758_v25 = vmov %v1023_v54  ;;  %v1025_v57 = vmul.f32 (%p835_p3), %v1920_v56, %v1023_v54 }
 0x9c1   : > { %1027 = vrot.lane.b32.xlu0 %v1025_v57, %s2282_s25 }
 0xa33   : > { %v1028_v58 = vpop.permute.xlu0 %1027 }
 0xa34   : > { %1031 = vst.msk [vmem:[#allocation3] sm:$0xff] %vm1030_vm11, %v1028_v58 }
 0xa35 LB: >> { %v2283_v62 = vmov 0.0   ;;  %vm2284_vm12 = vmmov 0   ;;  %s1528_s24 = sshll.u32 %s2259_s27, 3  ;;  %s2285_s28 = smov 104   ;;  %s2259_s27 = sphi %s2648_s27, %s1035_s27   ;;  %v2255_v61 = vphi %v2253_v61, %v2254_v61   ;;  %v2251_v60 = vphi %v2646_v60, %v2761_v60   ;;  %v2247_v59 = vphi %v2644_v59, %v2760_v59  }
 0xa36   : >> { %1620 = vmatprep.subr.mxu0 %v2283_v62  ;;  %1622 = vmatprep.mubr.msk.f32.mxu0 %vm2284_vm12, %v2283_v62  ;;  %s1042_s22 = scalar_lea.vmem [#allocation2], %s1528_s24  ;;  %v1126_v4 = vstv %s1528_s24  ;;  %s2286_s29 = smov 72  }
 0xa37   : >> { %1625 = vmatprep.subr.mxu1 %v2283_v62  ;;  %1627 = vmatprep.mubr.msk.f32.mxu1 %vm2284_vm12, %v2283_v62  ;;  %v1043_v63 = vld [vmem:[%s1042_s22] sm:$0xff]  ;;  %v1127_v5 = vadd.s32 %v1126_v4, %v2579_v26  ;;  %s1035_s27 = sadd.s32 1, %s2259_s27  }
 0xa38   : >> { %1048 = vrot.lane.b32.xlu0 %v1043_v63, %s2285_s28  ;;  %p1034_p5 = scmp.ge.s32.totalorder %s1035_s27, 1 }
 0xa39   : >> { %vm1128_vm13 = vcmp.le.s32.totalorder %v1127_v5, %v2561_v16  ;;  %v1232_v30 = vld [vmem:[#allocation10] sm:$0xff] (%p1034_p5)  ;;  %v1233_v31 = vld [vmem:[#allocation10 + $0x8] sm:$0xff] (%p1034_p5)  ;;  %v1234_v32 = vld [vmem:[#allocation10 + $0x10] sm:$0xff] (%p1034_p5)  ;;  %s2287_s8 = smov (%p1034_p5), 24   ;;  %vm1229_vm14 = vcmask (%p1034_p5), 261312   ;;  %s1534_s5 = sshll.u32 (%p1034_p5), %s2187_s18, 7 }
 0xa3a   : > { %v1654_v33 = vpack.c.bf16 (%p1034_p5), %v1233_v31, %v1232_v30  ;;  %v1235_v34 = vld [vmem:[#allocation10 + $0x18] sm:$0xff] (%p1034_p5)  ;;  %s1325_s10 = sshll.u32 (%p1034_p5), %s2567_s23, 4  ;;  %s2681_s21 = scalar_lea.hbm (%p1034_p5), %s2736_s4, %s1534_s5  ;;  %s2683_s10 = int_to_ptr.vmem [resolvable:$true] %s1325_s10 }
 0xa3b   : > { %v1657_v35 = vpack.c.bf16 (%p1034_p5), %v1235_v34, %v1234_v32  ;;  %s1311_s26 = scalar_lea.sflag (%p1034_p5), [#allocation6], %s2529_s6  ;;  %s2041_s14 = scalar_lea.vmem (%p1034_p5), %s2683_s10, 128 }
 0xa3c   : >> { %1045 = vrot.lane.b32.xlu0 %v2563_v18, %s2285_s28  ;;  %p2042_p7 = scmp.ne.s32.totalorder (%p1034_p5), %s2683_s10, %s2041_s14  ;;  %s2288_s18 = smov (%p1034_p5), [#allocation12]  }
 0xa3d   : > { %s2045_s11 = sshll.u32 (%p1034_p5), %s2288_s18, 4  ;;  %s2046_s11 = int_to_ptr.vmem [resolvable:$false] %s2045_s11 }
 0xa3e   : > { %p2043_p9 = pnand (%p1034_p5), %p2042_p7, %p2474_p10  ;;  %s2047_s25 = scalar_lea.vmem (%p1034_p5), %s2046_s11, 256 }
 0xa3f   : > { %p2048_p4 = scmp.lt.s32.totalorder (%p1034_p5), %s2683_s10, %s2046_s11  ;;  %p2049_p2 = scmp.lt.s32.totalorder (%p1034_p5), %s2047_s25, %s2041_s14 }
 0xa40   : > { %p2044_p0 = pneg (%p1034_p5), %p2043_p9 }
 0xa41   : > { %p2050_p8 = por (%p1034_p5), %p2049_p2, %p2048_p4 }
 0xa43   : > { %p2051_p1 = pnand (%p1034_p5), %p2050_p8, %p2044_p0 }
 0xaaa   : >> { %v1049_v2 = vpop.permute.xlu0 %1048 }
 0xaab   : >> { %1621 = vmatpush3.xpose.msk.msra.mxu0 %vm454_vm4, %v1049_v2 }
 0xaac   : > { %1653 = vmatprep.subr.bf16.mxu0 (%p1034_p5), %v2267_v0 }
 0xaae   : >> { %v1046_v3 = vpop.permute.xlu0 %1045 }
 0xaaf   : >> { %1623 = vmatmul.mubr.msk.f32.vlgmr.msra.gmra.mrb[0].mxu0 %vm454_vm4, %v1046_v3 }
 0xab0   : > { %1638 = vmatprep.mubr.msk.f32.mxu0 (%p1034_p5), %vm2268_vm0, %v2269_v1  ;;  %1655 = vmatpush3.bf16.msra.mxu0 (%p1034_p5), %v1654_v33 }
 0xab1   : > { %1656 = vmatprep.subr.bf16.mxu0 (%p1034_p5), %v2267_v0 }
 0xab4   : > { %1658 = vmatpush3.bf16.msra.mxu0 (%p1034_p5), %v1657_v35 }
 0xb82   : >> { %v1120_v6 = vpop.f32.mrb[0].mxu0 }
 0xb83   : >> { %v1129_v7 = vsel %vm1128_vm13, %v1120_v6, -1e+30  ;;  %v1624_v8 = vpop.f32.mrb[1].mxu0 }
 0xb84   : >> { %v1130_v9 = vsel %vm454_vm4, %v1129_v7, -inf }
 0xb85   : >> { %1131 = vmax.xlane.f32.xlu1 %v1130_v9 }
 0xb96   : >> { %1146 = vrot.lane.b32.xlu1 %v1043_v63, %s2286_s29 }
 0xc12   : >> { %v1132_v10 = vpop.xlane.xlu1 %1131 }
 0xc13   : >> { %v1133_v11 = vmax.f32 %v2255_v61, %v1132_v10  }
 0xc15   : >> { %v1134_v12 = vsub.f32 %v2255_v61, %v1133_v11  ;;  %v1137_v13 = vsub.f32 %v1129_v7, %v1133_v11  ;;  %v2254_v61 = vmov %v1133_v11  }
 0xc16   : >> { %v1147_v14 = vpop.permute.xlu1 %1146 }
 0xc17   : >> { %v1138_v15 = vmul.f32 1.442695, %v1137_v13  ;;  %1626 = vmatpush3.msra.mxu1 %v1147_v14  ;;  %v1135_v20 = vmul.f32 1.442695, %v1134_v12 }
 0xc19   : >> { %1921 = vpow2.f32 %v1138_v15 }
 0xc1a   : >> { %1923 = vpow2.f32 %v1135_v20 }
 0xc23   : >> { %v1922_v17 = vpop.eup %1921 }
 0xc24   : >> { %1628 = vmatmul.mubr.msk.f32.vlgmr.msra.gmra.mrb[0].mxu1 %vm454_vm4, %v1922_v17  ;;  %v1141_v19 = vsel %vm454_vm4, %v1922_v17, 0.0  ;;  %v1924_v21 = vpop.eup %1923 }
 0xc25   : >> { %1142 = vadd.xlane.f32.xlu0 %v1141_v19  ;;  %v1140_v22 = vmul.f32 %v2251_v60, %v1924_v21  ;;  %v1145_v25 = vmul.f32 %v2247_v59, %v1924_v21 }
 0xcb2   : >> { %v1143_v23 = vpop.xlane.xlu0 %1142 }
 0xcb3   : >> { %v1144_v24 = vadd.f32 %v1143_v23, %v1140_v22  }
 0xcb5   : >> { %v2761_v60 = vmov %v1144_v24  ;;  %1925 = vrcp.f32 (%p1034_p5), %v1144_v24 }
 0xcbf   : > { %v1926_v36 = vpop.eup (%p1034_p5), %1925 }
 0xcf4   : > { %1037 = sbr.rel (!%p1034_p5) target bundleno = 2613 (0xa35), region = 163 }
 0xcf7   : >> { %v1218_v27 = vpop.f32.mrb[0].mxu1 }
 0xcf8   : >> { %v1222_v28 = vadd.f32 %v1218_v27, %v1145_v25   ;;  %v1629_v29 = vpop.f32.mrb[1].mxu1 }
 0xcfa   : >> { %v2760_v59 = vmov %v1222_v28  ;;  %v1224_v16 = vmul.f32 (%p1034_p5), %v1926_v36, %v1222_v28 }
 0xcfc   : > { %1226 = vrot.lane.b32.xlu0 %v1224_v16, %s2287_s8 }
 0xd6e   : > { %v1227_v18 = vpop.permute.xlu0 %1226 }
 0xd6f   : > { %1230 = vst.msk [vmem:[#allocation3] sm:$0xff] %vm1229_vm14, %v1227_v18 }
 0xd76   : > { %v1231_v1 = vld [vmem:[#allocation3] sm:$0xff] }
 0xd77   : > { %1639 = vmatmul.mubr.msk.f32.vlgmr.msra.gmra.mrb[0].mxu0 %vm280_vm1, %v1231_v1 }
 0xe4a   : > { %v1305_v0 = vpop.f32.mrb[0].mxu0 }
 0xe4b   : > { %1309 = vst.msk [vmem:[%s2567_s23] sm:$0xff] %vm280_vm1, %v1305_v0  ;;  %v1640_v26 = vpop.f32.mrb[1].mxu0 }
 0xe4c   : > { %2054 = shalt.err (!%p2051_p1)
}
 0xe4d   : > { %s2055_s6 = scalar_lea.hbm %s2681_s21, 128  ;;  %s2059_s24 = scalar_lea.hbm %s2736_s4, 256 }
 0xe4e   : > { %p2056_p12 = scmp.ne.s32.totalorder %s2681_s21, %s2055_s6  ;;  %p2060_p6 = scmp.lt.u32.totalorder %s2681_s21, %s2736_s4 }
 0xe4f   : > { %p2061_p3 = scmp.lt.u32.totalorder %s2059_s24, %s2055_s6  ;;  %p2063_p7 = scmp.lt.u32.totalorder %s2055_s6, %s2681_s21 }
 0xe50   : > { %p2057_p11 = pnand %p2056_p12, %p2474_p10 }
 0xe51   : > { %p2062_p5 = por %p2061_p3, %p2060_p6 }
 0xe52   : > { %p2058_p13 = pneg %p2057_p11 }
 0xe53   : > { %p2064_p9 = por %p2063_p7, %p2062_p5 }
 0xe55   : > { %p2065_p0 = pnand %p2064_p9, %p2058_p13 }
 0xe57   : > { %2068 = shalt.err (!%p2065_p0)
}
 0xe58   : > { %1673 = dma.vmem_to_hbm [thread:$0]  (%p2474_p10), %s2683_s10, 128, %s2681_s21, %s1311_s26  }
 0xe59 PF: > { %s2762_s29 = sld [smem:[#allocation17_spill]]  ;;  %s1337_s8 = sand.u32 1, %s2175_s15  }
 0xe5a   : > { %p2764_p2 = scmp.ge.s32.totalorder %s2195_s20, 2  ;;  %s1338_s5 = scalar_lea.sflag [#allocation6], %s1337_s8 }
 0xe5f   : > { %p2763_p4 = scmp.ne.s32.totalorder %s2762_s29, 0 }
 0xe61   : > { %p1690_p8 = pnand %p2764_p2, %p2763_p4 }
 0xe63   : > { %2170 = dma.done.wait (!%p1690_p8), %s1338_s5, 128  }
 0xe64   : > { %2172 = vsyncadd (!%p1690_p8), %s1338_s5, 4294967168  ;;  %s22_s20 = sadd.s32 1, %s2195_s20   ;;  %s2765_s15 = smov %s2179_s16 }
 0xe65   : > { %p19_p1 = scmp.ge.s32.totalorder %s22_s20, 4   ;;  %s2766_s16 = smov %s2183_s17 }
 0xe66   : > { %s2767_s17 = smov %s2486_s7  ;;  %s2768_s18 = smov %s2191_s19 }
 0xe67   : > { %s2769_s19 = smov %s2771_s30  ;;  %21 = sbr.rel (!%p19_p1) target bundleno = 8 (0x8), region = 174 }
 0xe6e   :  { %1343 = vsyncpa [#allocation5], 1 }
 0xe6f   :  { %1345 = vsyncpa [#allocation5 + $0x1], 1 }
 0xe70   :  { %1346 = vsyncpa [#allocation8], 1 }
 0xe71   :  { %1347 = vsyncpa [#allocation11], 1 }
 0xe72   :  { %1348 = vsyncpa [#allocation6], 1 }
 0xe73   :  { %1350 = vsyncpa [#allocation6 + $0x1], 1 }

</bundles_post_ra>
